<compile_context>
chip_gen: v7x
topology: tpu7x:2x2x1
jax: 0.10.0
libtpu: 0.0.40
codegen_flags: <defaults>
</compile_context>

<pallas_src>
import jax
import jax.numpy as jnp
from jax.experimental import pallas as pl
from jax.experimental.pallas import tpu as pltpu

LANE = 128
SUBLANE = 8


def _round_up(n, m):
    return ((n + m - 1) // m) * m


def _device_kind():
    try:
        return jax.devices()[0].device_kind.lower()
    except Exception:
        return ""


# --------------------------------------------------------------------------- #
# Kernel: one batch tile of the whole fused MLP.
# --------------------------------------------------------------------------- #
def actor_mlp_kernel(x_ref, w1_ref, b1_ref, w2_ref, b2_ref, w3_ref, b3_ref, out_ref):
    x = x_ref[...]                           # (TB, in_dim) f32
    tb, in_dim = x.shape
    n1p = w1_ref.shape[1]                    # lane-padded hidden-1 width (512)
    n2p = w2_ref.shape[1]                    # lane-padded hidden-2 width (256)
    mxu_dtype = w2_ref.dtype                 # bf16 (default) or f32

    # ---- Fused layer 1 (VPU FMAs) + layer 2 K-accumulation (MXU), per 128-lane
    # chunk of the hidden-1 width: the full f32 y1 never materializes.
    y2 = jnp.zeros((tb, n2p), jnp.float32)
    for c in range(n1p // LANE):             # static unroll (4 chunks at 512)
        lo = c * LANE
        y1c = b1_ref[:, lo:lo + LANE]        # (1, 128) f32, broadcasts over rows
        for k in range(in_dim):              # static unroll (in_dim = 3)
            y1c = y1c + x[:, k:k + 1] * w1_ref[k:k + 1, lo:lo + LANE]
        y1c = jnp.maximum(y1c, 0.0).astype(mxu_dtype)            # (TB, 128)
        y2 = y2 + jnp.dot(y1c, w2_ref[lo:lo + LANE, :],
                          preferred_element_type=jnp.float32)    # (TB, N2P) f32
    y2 = jnp.maximum(y2 + b2_ref[...], 0.0)                      # (TB, N2P) f32

    # ---- Layer 3 on the MXU; output width padded to a full 128-lane tile. ----
    y3 = jnp.dot(y2.astype(mxu_dtype), w3_ref[...],
                 preferred_element_type=jnp.float32)
    out_ref[...] = jnp.tanh(y3 + b3_ref[...]).astype(out_ref.dtype)


# --------------------------------------------------------------------------- #
# Parameter preparation: lane-align widths (zero pad) + bf16 matmul operands.
# Zero padding is exact: padded weight rows/cols contribute zeros, and padded
# rows/cols are sliced off in the wrapper.
# --------------------------------------------------------------------------- #
def prepare_params(params, *, use_bf16=True):
    w1, b1 = params["w1"], params["b1"]
    w2, b2 = params["w2"], params["b2"]
    w3, b3 = params["w3"], params["b3"]

    in_dim, n1 = w1.shape
    n2 = w2.shape[1]
    out_dim = w3.shape[1]

    n1p = _round_up(n1, LANE)            # 400 -> 512
    n2p = _round_up(n2, LANE)            # 200 -> 256
    outp = _round_up(out_dim, LANE)      # 1   -> 128

    def pad2(a, rows, cols):
        return jnp.pad(a, ((0, rows - a.shape[0]), (0, cols - a.shape[1])))

    w1p = pad2(w1, in_dim, n1p)          # stays f32 (VPU layer)
    b1p = pad2(b1, 1, n1p)
    w2p = pad2(w2, n1p, n2p)
    b2p = pad2(b2, 1, n2p)
    w3p = pad2(w3, n2p, outp)
    b3p = pad2(b3, 1, outp)

    mxu_dtype = jnp.bfloat16 if use_bf16 else jnp.float32
    w2p = w2p.astype(mxu_dtype)          # MXU operands only; biases stay f32
    w3p = w3p.astype(mxu_dtype)

    return {"w1": w1p, "b1": b1p, "w2": w2p, "b2": b2p,
            "w3": w3p, "b3": b3p, "out_dim": out_dim}


# --------------------------------------------------------------------------- #
# Generation-aware batch-tile selection.
# --------------------------------------------------------------------------- #
def _pick_batch_tile(B, kind):
    is_v5 = "v5" in kind
    is_v7 = "v7" in kind
    if B >= 512:
        return 128 if is_v5 else 256     # 256-wide MXU M-dim on v6e/v7x
    if B > 128:
        return 128
    if is_v7 and B >= 16:
        # Split moderate batches into >=2 row tiles so both v7x TensorCores
        # get work under dimension_semantics=("parallel",).
        return _round_up(pl.cdiv(B, 2), SUBLANE)
    return max(SUBLANE, _round_up(B, SUBLANE))


# --------------------------------------------------------------------------- #
# Wrapper: batch grid, weight-stationary BlockSpecs.
# --------------------------------------------------------------------------- #
def actor_forward(x, p, *, block_batch=None, out_dtype=jnp.float32):
    B, in_dim = x.shape
    out_dim = p["out_dim"]
    outp = p["w3"].shape[1]

    tb = block_batch if block_batch is not None else _pick_batch_tile(B, _device_kind())
    bp = _round_up(B, tb)
    xp = jnp.pad(x, ((0, bp - B), (0, 0))) if bp != B else x

    full = lambda a: pl.BlockSpec(a.shape, lambda i: (0,) * a.ndim)  # VMEM-resident

    # TODO(synk): for repeated small-batch rollout calls with fixed weights,
    # prefetch w2/w3 across pallas_calls (P10 cross-call DMA futures) instead of
    # re-streaming ~330 KiB of weights on every invocation.
    out_padded = pl.pallas_call(
        actor_mlp_kernel,
        out_shape=jax.ShapeDtypeStruct((bp, outp), out_dtype),
        grid=(bp // tb,),
        in_specs=[
            pl.BlockSpec((tb, in_dim), lambda i: (i, 0)),   # x: streamed per row tile
            full(p["w1"]), full(p["b1"]),
            full(p["w2"]), full(p["b2"]),
            full(p["w3"]), full(p["b3"]),
        ],
        out_specs=pl.BlockSpec((tb, outp), lambda i: (i, 0)),
        compiler_params=pltpu.CompilerParams(
            dimension_semantics=("parallel",),              # shard row tiles across TCs
        ),
    )(xp, p["w1"], p["b1"], p["w2"], p["b2"], p["w3"], p["b3"])

    return out_padded[:B, :out_dim]


# --------------------------------------------------------------------------- #
# Init mirroring PyTorch nn.Linear defaults; weights stored as (in, out) = W.T.
# --------------------------------------------------------------------------- #
def init_params(key, input_dim=3, n1=400, n2=200, output_dim=1):
    ks = jax.random.split(key, 6)

    def linear(kw, kb, fan_in, fan_out):
        bound = 1.0 / jnp.sqrt(jnp.float32(fan_in))
        w = jax.random.uniform(kw, (fan_in, fan_out), jnp.float32, -bound, bound)
        b = jax.random.uniform(kb, (1, fan_out), jnp.float32, -bound, bound)
        return w, b

    w1, b1 = linear(ks[0], ks[1], input_dim, n1)
    w2, b2 = linear(ks[2], ks[3], n1, n2)
    w3, b3 = linear(ks[4], ks[5], n2, output_dim)
    return {"w1": w1, "b1": b1, "w2": w2, "b2": b2, "w3": w3, "b3": b3}


def reference_forward(x, p):
    y1 = jnp.maximum(x @ p["w1"] + p["b1"], 0.0)
    y2 = jnp.maximum(y1 @ p["w2"] + p["b2"], 0.0)
    return jnp.tanh(y2 @ p["w3"] + p["b3"])


if __name__ == "__main__":
    key = jax.random.PRNGKey(0)
    k_x, k_p, k_big = jax.random.split(key, 3)

    B, INPUT, N1, N2, OUTPUT = 2, 3, 400, 200, 1
    x = jax.random.normal(k_x, (B, INPUT), dtype=jnp.float32)
    params = init_params(k_p, INPUT, N1, N2, OUTPUT)

    # Default (bf16 MXU operands, f32 accumulation), tiny batch.
    prep16 = prepare_params(params)                      # use_bf16=True default
    out = jax.block_until_ready(actor_forward(x, prep16))
    ref = reference_forward(x, params)
    assert out.shape == (B, OUTPUT), out.shape
    assert jnp.allclose(out, ref, atol=3e-2, rtol=3e-2), (out, ref)

    # f32 operands: bit-faithful-ish path matches the PyTorch f32 module tightly.
    prep32 = prepare_params(params, use_bf16=False)
    out32 = jax.block_until_ready(actor_forward(x, prep32))
    assert jnp.allclose(out32, ref, atol=1e-5, rtol=1e-5), (out32, ref)

    # Larger batch exercises the multi-tile batch grid (weight-stationary).
    xb = jax.random.normal(k_big, (256, INPUT), dtype=jnp.float32)
    refb = reference_forward(xb, params)
    outb = jax.block_until_ready(actor_forward(xb, prep16))
    assert outb.shape == (256, OUTPUT), outb.shape
    assert jnp.allclose(outb, refb, atol=3e-2, rtol=3e-2)

    outb32 = jax.block_until_ready(actor_forward(xb, prep32))
    assert jnp.allclose(outb32, refb, atol=1e-5, rtol=1e-5)

    # bf16 output writeback option (halves the padded output HBM stream).
    outb16 = jax.block_until_ready(
        actor_forward(xb, prep16, out_dtype=jnp.bfloat16)).astype(jnp.float32)
    assert jnp.allclose(outb16, refb, atol=3e-2, rtol=3e-2)

    print("KERNEL_OK")
</pallas_src>

<mosaic_0001>
module attributes {stable_mosaic.version = 11 : i64} {
  func.func @actor_mlp_kernel(%arg0: i32, %arg1: memref<8x3xf32, #tpu.memory_space<vmem>>, %arg2: memref<3x512xf32, #tpu.memory_space<vmem>>, %arg3: memref<1x512xf32, #tpu.memory_space<vmem>>, %arg4: memref<512x256xbf16, #tpu.memory_space<vmem>>, %arg5: memref<1x256xf32, #tpu.memory_space<vmem>>, %arg6: memref<256x128xbf16, #tpu.memory_space<vmem>>, %arg7: memref<1x128xf32, #tpu.memory_space<vmem>>, %arg8: memref<8x128xf32, #tpu.memory_space<vmem>>) attributes {dimension_semantics = [#tpu.dimension_semantics<parallel>], iteration_bounds = array<i64: 1>, scalar_prefetch = 0 : i64, scratch_operands = 0 : i64, tpu.core_type = #tpu.core_type<tc>, window_params = [{transform_indices = @transform_0, window_bounds = array<i64: 8, 3>}, {pipeline_mode = #tpu.pipeline_mode<synchronous>, transform_indices = @transform_1, window_bounds = array<i64: 3, 512>}, {pipeline_mode = #tpu.pipeline_mode<synchronous>, transform_indices = @transform_2, window_bounds = array<i64: 1, 512>}, {pipeline_mode = #tpu.pipeline_mode<synchronous>, transform_indices = @transform_3, window_bounds = array<i64: 512, 256>}, {pipeline_mode = #tpu.pipeline_mode<synchronous>, transform_indices = @transform_4, window_bounds = array<i64: 1, 256>}, {pipeline_mode = #tpu.pipeline_mode<synchronous>, transform_indices = @transform_5, window_bounds = array<i64: 256, 128>}, {pipeline_mode = #tpu.pipeline_mode<synchronous>, transform_indices = @transform_6, window_bounds = array<i64: 1, 128>}, {transform_indices = @transform_7, window_bounds = array<i64: 8, 128>}]} {
    %c0 = arith.constant 0 : index
    %c0_0 = arith.constant 0 : index
    %0 = vector.load %arg1[%c0, %c0_0] : memref<8x3xf32, #tpu.memory_space<vmem>>, vector<8x3xf32>
    %cst = arith.constant 0.000000e+00 : f32
    %1 = vector.broadcast %cst : f32 to vector<8x256xf32>
    %c0_1 = arith.constant 0 : index
    %c0_2 = arith.constant 0 : index
    %2 = vector.load %arg3[%c0_1, %c0_2] : memref<1x512xf32, #tpu.memory_space<vmem>>, vector<1x128xf32>
    %3 = vector.extract_strided_slice %0 {offsets = [0, 0], sizes = [8, 1], strides = [1, 1]} : vector<8x3xf32> to vector<8x1xf32>
    %c0_3 = arith.constant 0 : index
    %c0_4 = arith.constant 0 : index
    %4 = vector.load %arg2[%c0_3, %c0_4] : memref<3x512xf32, #tpu.memory_space<vmem>>, vector<1x128xf32>
    %5 = vector.broadcast %3 : vector<8x1xf32> to vector<8x128xf32>
    %6 = vector.broadcast %4 : vector<1x128xf32> to vector<8x128xf32>
    %7 = arith.mulf %5, %6 : vector<8x128xf32>
    %8 = vector.broadcast %2 : vector<1x128xf32> to vector<8x128xf32>
    %9 = arith.addf %8, %7 : vector<8x128xf32>
    %10 = vector.extract_strided_slice %0 {offsets = [0, 1], sizes = [8, 1], strides = [1, 1]} : vector<8x3xf32> to vector<8x1xf32>
    %c1 = arith.constant 1 : index
    %c0_5 = arith.constant 0 : index
    %11 = vector.load %arg2[%c1, %c0_5] : memref<3x512xf32, #tpu.memory_space<vmem>>, vector<1x128xf32>
    %12 = vector.broadcast %10 : vector<8x1xf32> to vector<8x128xf32>
    %13 = vector.broadcast %11 : vector<1x128xf32> to vector<8x128xf32>
    %14 = arith.mulf %12, %13 : vector<8x128xf32>
    %15 = arith.addf %9, %14 : vector<8x128xf32>
    %16 = vector.extract_strided_slice %0 {offsets = [0, 2], sizes = [8, 1], strides = [1, 1]} : vector<8x3xf32> to vector<8x1xf32>
    %c2 = arith.constant 2 : index
    %c0_6 = arith.constant 0 : index
    %17 = vector.load %arg2[%c2, %c0_6] : memref<3x512xf32, #tpu.memory_space<vmem>>, vector<1x128xf32>
    %18 = vector.broadcast %16 : vector<8x1xf32> to vector<8x128xf32>
    %19 = vector.broadcast %17 : vector<1x128xf32> to vector<8x128xf32>
    %20 = arith.mulf %18, %19 : vector<8x128xf32>
    %21 = arith.addf %15, %20 : vector<8x128xf32>
    %cst_7 = arith.constant 0.000000e+00 : f32
    %22 = vector.broadcast %cst_7 : f32 to vector<8x128xf32>
    %23 = arith.maximumf %21, %22 : vector<8x128xf32>
    %24 = arith.truncf %23 : vector<8x128xf32> to vector<8x128xbf16>
    %c0_8 = arith.constant 0 : index
    %c0_9 = arith.constant 0 : index
    %25 = vector.load %arg4[%c0_8, %c0_9] : memref<512x256xbf16, #tpu.memory_space<vmem>>, vector<128x256xbf16>
    %cst_10 = arith.constant dense<0.000000e+00> : vector<8x256xf32>
    %26 = tpu.matmul %24, %25, %cst_10 {dimension_numbers = #tpu.dot_dimension_numbers<[1], [0], [0], [1], [0, 0, 1, 1], [], []>} : vector<8x128xbf16>, vector<128x256xbf16>, vector<8x256xf32> -> vector<8x256xf32>
    %27 = arith.addf %1, %26 : vector<8x256xf32>
    %c0_11 = arith.constant 0 : index
    %c128 = arith.constant 128 : index
    %28 = vector.load %arg3[%c0_11, %c128] : memref<1x512xf32, #tpu.memory_space<vmem>>, vector<1x128xf32>
    %29 = vector.extract_strided_slice %0 {offsets = [0, 0], sizes = [8, 1], strides = [1, 1]} : vector<8x3xf32> to vector<8x1xf32>
    %c0_12 = arith.constant 0 : index
    %c128_13 = arith.constant 128 : index
    %30 = vector.load %arg2[%c0_12, %c128_13] : memref<3x512xf32, #tpu.memory_space<vmem>>, vector<1x128xf32>
    %31 = vector.broadcast %29 : vector<8x1xf32> to vector<8x128xf32>
    %32 = vector.broadcast %30 : vector<1x128xf32> to vector<8x128xf32>
    %33 = arith.mulf %31, %32 : vector<8x128xf32>
    %34 = vector.broadcast %28 : vector<1x128xf32> to vector<8x128xf32>
    %35 = arith.addf %34, %33 : vector<8x128xf32>
    %36 = vector.extract_strided_slice %0 {offsets = [0, 1], sizes = [8, 1], strides = [1, 1]} : vector<8x3xf32> to vector<8x1xf32>
    %c1_14 = arith.constant 1 : index
    %c128_15 = arith.constant 128 : index
    %37 = vector.load %arg2[%c1_14, %c128_15] : memref<3x512xf32, #tpu.memory_space<vmem>>, vector<1x128xf32>
    %38 = vector.broadcast %36 : vector<8x1xf32> to vector<8x128xf32>
    %39 = vector.broadcast %37 : vector<1x128xf32> to vector<8x128xf32>
    %40 = arith.mulf %38, %39 : vector<8x128xf32>
    %41 = arith.addf %35, %40 : vector<8x128xf32>
    %42 = vector.extract_strided_slice %0 {offsets = [0, 2], sizes = [8, 1], strides = [1, 1]} : vector<8x3xf32> to vector<8x1xf32>
    %c2_16 = arith.constant 2 : index
    %c128_17 = arith.constant 128 : index
    %43 = vector.load %arg2[%c2_16, %c128_17] : memref<3x512xf32, #tpu.memory_space<vmem>>, vector<1x128xf32>
    %44 = vector.broadcast %42 : vector<8x1xf32> to vector<8x128xf32>
    %45 = vector.broadcast %43 : vector<1x128xf32> to vector<8x128xf32>
    %46 = arith.mulf %44, %45 : vector<8x128xf32>
    %47 = arith.addf %41, %46 : vector<8x128xf32>
    %cst_18 = arith.constant 0.000000e+00 : f32
    %48 = vector.broadcast %cst_18 : f32 to vector<8x128xf32>
    %49 = arith.maximumf %47, %48 : vector<8x128xf32>
    %50 = arith.truncf %49 : vector<8x128xf32> to vector<8x128xbf16>
    %c128_19 = arith.constant 128 : index
    %c0_20 = arith.constant 0 : index
    %51 = vector.load %arg4[%c128_19, %c0_20] : memref<512x256xbf16, #tpu.memory_space<vmem>>, vector<128x256xbf16>
    %cst_21 = arith.constant dense<0.000000e+00> : vector<8x256xf32>
    %52 = tpu.matmul %50, %51, %cst_21 {dimension_numbers = #tpu.dot_dimension_numbers<[1], [0], [0], [1], [0, 0, 1, 1], [], []>} : vector<8x128xbf16>, vector<128x256xbf16>, vector<8x256xf32> -> vector<8x256xf32>
    %53 = arith.addf %27, %52 : vector<8x256xf32>
    %c0_22 = arith.constant 0 : index
    %c256 = arith.constant 256 : index
    %54 = vector.load %arg3[%c0_22, %c256] : memref<1x512xf32, #tpu.memory_space<vmem>>, vector<1x128xf32>
    %55 = vector.extract_strided_slice %0 {offsets = [0, 0], sizes = [8, 1], strides = [1, 1]} : vector<8x3xf32> to vector<8x1xf32>
    %c0_23 = arith.constant 0 : index
    %c256_24 = arith.constant 256 : index
    %56 = vector.load %arg2[%c0_23, %c256_24] : memref<3x512xf32, #tpu.memory_space<vmem>>, vector<1x128xf32>
    %57 = vector.broadcast %55 : vector<8x1xf32> to vector<8x128xf32>
    %58 = vector.broadcast %56 : vector<1x128xf32> to vector<8x128xf32>
    %59 = arith.mulf %57, %58 : vector<8x128xf32>
    %60 = vector.broadcast %54 : vector<1x128xf32> to vector<8x128xf32>
    %61 = arith.addf %60, %59 : vector<8x128xf32>
    %62 = vector.extract_strided_slice %0 {offsets = [0, 1], sizes = [8, 1], strides = [1, 1]} : vector<8x3xf32> to vector<8x1xf32>
    %c1_25 = arith.constant 1 : index
    %c256_26 = arith.constant 256 : index
    %63 = vector.load %arg2[%c1_25, %c256_26] : memref<3x512xf32, #tpu.memory_space<vmem>>, vector<1x128xf32>
    %64 = vector.broadcast %62 : vector<8x1xf32> to vector<8x128xf32>
    %65 = vector.broadcast %63 : vector<1x128xf32> to vector<8x128xf32>
    %66 = arith.mulf %64, %65 : vector<8x128xf32>
    %67 = arith.addf %61, %66 : vector<8x128xf32>
    %68 = vector.extract_strided_slice %0 {offsets = [0, 2], sizes = [8, 1], strides = [1, 1]} : vector<8x3xf32> to vector<8x1xf32>
    %c2_27 = arith.constant 2 : index
    %c256_28 = arith.constant 256 : index
    %69 = vector.load %arg2[%c2_27, %c256_28] : memref<3x512xf32, #tpu.memory_space<vmem>>, vector<1x128xf32>
    %70 = vector.broadcast %68 : vector<8x1xf32> to vector<8x128xf32>
    %71 = vector.broadcast %69 : vector<1x128xf32> to vector<8x128xf32>
    %72 = arith.mulf %70, %71 : vector<8x128xf32>
    %73 = arith.addf %67, %72 : vector<8x128xf32>
    %cst_29 = arith.constant 0.000000e+00 : f32
    %74 = vector.broadcast %cst_29 : f32 to vector<8x128xf32>
    %75 = arith.maximumf %73, %74 : vector<8x128xf32>
    %76 = arith.truncf %75 : vector<8x128xf32> to vector<8x128xbf16>
    %c256_30 = arith.constant 256 : index
    %c0_31 = arith.constant 0 : index
    %77 = vector.load %arg4[%c256_30, %c0_31] : memref<512x256xbf16, #tpu.memory_space<vmem>>, vector<128x256xbf16>
    %cst_32 = arith.constant dense<0.000000e+00> : vector<8x256xf32>
    %78 = tpu.matmul %76, %77, %cst_32 {dimension_numbers = #tpu.dot_dimension_numbers<[1], [0], [0], [1], [0, 0, 1, 1], [], []>} : vector<8x128xbf16>, vector<128x256xbf16>, vector<8x256xf32> -> vector<8x256xf32>
    %79 = arith.addf %53, %78 : vector<8x256xf32>
    %c0_33 = arith.constant 0 : index
    %c384 = arith.constant 384 : index
    %80 = vector.load %arg3[%c0_33, %c384] : memref<1x512xf32, #tpu.memory_space<vmem>>, vector<1x128xf32>
    %81 = vector.extract_strided_slice %0 {offsets = [0, 0], sizes = [8, 1], strides = [1, 1]} : vector<8x3xf32> to vector<8x1xf32>
    %c0_34 = arith.constant 0 : index
    %c384_35 = arith.constant 384 : index
    %82 = vector.load %arg2[%c0_34, %c384_35] : memref<3x512xf32, #tpu.memory_space<vmem>>, vector<1x128xf32>
    %83 = vector.broadcast %81 : vector<8x1xf32> to vector<8x128xf32>
    %84 = vector.broadcast %82 : vector<1x128xf32> to vector<8x128xf32>
    %85 = arith.mulf %83, %84 : vector<8x128xf32>
    %86 = vector.broadcast %80 : vector<1x128xf32> to vector<8x128xf32>
    %87 = arith.addf %86, %85 : vector<8x128xf32>
    %88 = vector.extract_strided_slice %0 {offsets = [0, 1], sizes = [8, 1], strides = [1, 1]} : vector<8x3xf32> to vector<8x1xf32>
    %c1_36 = arith.constant 1 : index
    %c384_37 = arith.constant 384 : index
    %89 = vector.load %arg2[%c1_36, %c384_37] : memref<3x512xf32, #tpu.memory_space<vmem>>, vector<1x128xf32>
    %90 = vector.broadcast %88 : vector<8x1xf32> to vector<8x128xf32>
    %91 = vector.broadcast %89 : vector<1x128xf32> to vector<8x128xf32>
    %92 = arith.mulf %90, %91 : vector<8x128xf32>
    %93 = arith.addf %87, %92 : vector<8x128xf32>
    %94 = vector.extract_strided_slice %0 {offsets = [0, 2], sizes = [8, 1], strides = [1, 1]} : vector<8x3xf32> to vector<8x1xf32>
    %c2_38 = arith.constant 2 : index
    %c384_39 = arith.constant 384 : index
    %95 = vector.load %arg2[%c2_38, %c384_39] : memref<3x512xf32, #tpu.memory_space<vmem>>, vector<1x128xf32>
    %96 = vector.broadcast %94 : vector<8x1xf32> to vector<8x128xf32>
    %97 = vector.broadcast %95 : vector<1x128xf32> to vector<8x128xf32>
    %98 = arith.mulf %96, %97 : vector<8x128xf32>
    %99 = arith.addf %93, %98 : vector<8x128xf32>
    %cst_40 = arith.constant 0.000000e+00 : f32
    %100 = vector.broadcast %cst_40 : f32 to vector<8x128xf32>
    %101 = arith.maximumf %99, %100 : vector<8x128xf32>
    %102 = arith.truncf %101 : vector<8x128xf32> to vector<8x128xbf16>
    %c384_41 = arith.constant 384 : index
    %c0_42 = arith.constant 0 : index
    %103 = vector.load %arg4[%c384_41, %c0_42] : memref<512x256xbf16, #tpu.memory_space<vmem>>, vector<128x256xbf16>
    %cst_43 = arith.constant dense<0.000000e+00> : vector<8x256xf32>
    %104 = tpu.matmul %102, %103, %cst_43 {dimension_numbers = #tpu.dot_dimension_numbers<[1], [0], [0], [1], [0, 0, 1, 1], [], []>} : vector<8x128xbf16>, vector<128x256xbf16>, vector<8x256xf32> -> vector<8x256xf32>
    %105 = arith.addf %79, %104 : vector<8x256xf32>
    %c0_44 = arith.constant 0 : index
    %c0_45 = arith.constant 0 : index
    %106 = vector.load %arg5[%c0_44, %c0_45] : memref<1x256xf32, #tpu.memory_space<vmem>>, vector<1x256xf32>
    %107 = vector.broadcast %106 : vector<1x256xf32> to vector<8x256xf32>
    %108 = arith.addf %105, %107 : vector<8x256xf32>
    %cst_46 = arith.constant 0.000000e+00 : f32
    %109 = vector.broadcast %cst_46 : f32 to vector<8x256xf32>
    %110 = arith.maximumf %108, %109 : vector<8x256xf32>
    %111 = arith.truncf %110 : vector<8x256xf32> to vector<8x256xbf16>
    %c0_47 = arith.constant 0 : index
    %c0_48 = arith.constant 0 : index
    %112 = vector.load %arg6[%c0_47, %c0_48] : memref<256x128xbf16, #tpu.memory_space<vmem>>, vector<256x128xbf16>
    %cst_49 = arith.constant dense<0.000000e+00> : vector<8x128xf32>
    %113 = tpu.matmul %111, %112, %cst_49 {dimension_numbers = #tpu.dot_dimension_numbers<[1], [0], [0], [1], [0, 0, 1, 1], [], []>} : vector<8x256xbf16>, vector<256x128xbf16>, vector<8x128xf32> -> vector<8x128xf32>
    %c0_50 = arith.constant 0 : index
    %c0_51 = arith.constant 0 : index
    %114 = vector.load %arg7[%c0_50, %c0_51] : memref<1x128xf32, #tpu.memory_space<vmem>>, vector<1x128xf32>
    %115 = vector.broadcast %114 : vector<1x128xf32> to vector<8x128xf32>
    %116 = arith.addf %113, %115 : vector<8x128xf32>
    %117 = math.tanh %116 : vector<8x128xf32>
    %c0_52 = arith.constant 0 : index
    %c0_53 = arith.constant 0 : index
    %118 = vector.load %arg8[%c0_52, %c0_53] : memref<8x128xf32, #tpu.memory_space<vmem>>, vector<8x128xf32>
    tpu.vector_store %arg8[%c0_52, %c0_53], %117 {strides = array<i32>} : memref<8x128xf32, #tpu.memory_space<vmem>>, vector<8x128xf32>,
    return
  }
  func.func @transform_0(%arg0: i32) -> (i32, i32) {
    %c0_i32 = arith.constant 0 : i32
    %c0_i32_0 = arith.constant 0 : i32
    return %arg0, %c0_i32 : i32, i32
  }
  func.func @transform_1(%arg0: i32) -> (i32, i32) {
    %c0_i32 = arith.constant 0 : i32
    %c0_i32_0 = arith.constant 0 : i32
    %c0_i32_1 = arith.constant 0 : i32
    return %c0_i32, %c0_i32_0 : i32, i32
  }
  func.func @transform_2(%arg0: i32) -> (i32, i32) {
    %c0_i32 = arith.constant 0 : i32
    %c0_i32_0 = arith.constant 0 : i32
    %c0_i32_1 = arith.constant 0 : i32
    return %c0_i32, %c0_i32_0 : i32, i32
  }
  func.func @transform_3(%arg0: i32) -> (i32, i32) {
    %c0_i32 = arith.constant 0 : i32
    %c0_i32_0 = arith.constant 0 : i32
    %c0_i32_1 = arith.constant 0 : i32
    return %c0_i32, %c0_i32_0 : i32, i32
  }
  func.func @transform_4(%arg0: i32) -> (i32, i32) {
    %c0_i32 = arith.constant 0 : i32
    %c0_i32_0 = arith.constant 0 : i32
    %c0_i32_1 = arith.constant 0 : i32
    return %c0_i32, %c0_i32_0 : i32, i32
  }
  func.func @transform_5(%arg0: i32) -> (i32, i32) {
    %c0_i32 = arith.constant 0 : i32
    %c0_i32_0 = arith.constant 0 : i32
    %c0_i32_1 = arith.constant 0 : i32
    return %c0_i32, %c0_i32_0 : i32, i32
  }
  func.func @transform_6(%arg0: i32) -> (i32, i32) {
    %c0_i32 = arith.constant 0 : i32
    %c0_i32_0 = arith.constant 0 : i32
    %c0_i32_1 = arith.constant 0 : i32
    return %c0_i32, %c0_i32_0 : i32, i32
  }
  func.func @transform_7(%arg0: i32) -> (i32, i32) {
    %c0_i32 = arith.constant 0 : i32
    %c0_i32_0 = arith.constant 0 : i32
    return %arg0, %c0_i32 : i32, i32
  }
}

</mosaic_0001>

<bundles_post_ra>
// kernel: tpu_custom_call.1
= control target key start
LH: loop header
LB: loop body
LE: loop exit
PB: predicated region body
PF: predicated region fallthrough
CT: control target
= control target key end

     0   :  { %12 = vsyncpa [#allocation3], 0  ;;  %s1437_s0 = inlined_call_operand.vmem [shape: f32[8,3], index: 0, kind: input, shape index: {}]   ;;  %s1438_s1 = inlined_call_operand.hbm [shape: f32[3,512], index: 1, kind: input, shape index: {}]   ;;  %s1439_s2 = inlined_call_operand.vmem [shape: f32[1,512], index: 2, kind: input, shape index: {}]   ;;  %s1440_s3 = inlined_call_operand.hbm [shape: bf16[512,256], index: 3, kind: input, shape index: {}]   ;;  %s1441_s4 = inlined_call_operand.vmem [shape: f32[1,256], index: 4, kind: input, shape index: {}]   ;;  %s1442_s5 = inlined_call_operand.hbm [shape: bf16[256,128], index: 5, kind: input, shape index: {}]   ;;  %s1443_s6 = inlined_call_operand.vmem [shape: f32[1,128], index: 6, kind: input, shape index: {}]   ;;  %s1444_s7 = inlined_call_operand.hbm [shape: f32[8,128], index: 7, kind: output, shape index: {}]  }
   0x1   :  { %13 = vsyncpa [#allocation6], 0 }
   0x2   :  { %14 = vsyncpa [#allocation4], 0  ;;  %s1306_s24 = smov [#allocation5]   ;;  %s1212_s28 = scalar_lea.hbm %s1440_s3, 8192 }
   0x3   :  { %s34_s25 = sshll.u32 %s1306_s24, 4  ;;  %p1213_p0 = scmp.ne.s32.totalorder %s1440_s3, %s1212_s28  ;;  %s35_s25 = int_to_ptr.vmem [resolvable:$true] %s34_s25 }
   0x4   :  { %p1216_p1 = scmp.lt.u32.totalorder %s1212_s28, %s1440_s3 }
   0x6   :  { %p1218_p2 = pnand %p1216_p1, %p1213_p0 }
   0x8   :  { %1221 = shalt.err (!%p1218_p2)
}
   0x9   :  { %s1222_s10 = scalar_lea.vmem %s35_s25, 8192  ;;  %p1227_p4 = scmp.lt.s32.totalorder %s35_s25, %s35_s25 }
   0xa   :  { %p1223_p3 = scmp.ne.s32.totalorder %s35_s25, %s1222_s10  ;;  %p1228_p5 = scmp.lt.s32.totalorder %s1222_s10, %s1222_s10 }
   0xc   :  { %p1229_p6 = por %p1228_p5, %p1227_p4 }
   0xe   :  { %p1230_p7 = pnand %p1229_p6, %p1223_p3 }
  0x10   :  { %1233 = shalt.err (!%p1230_p7)
}
  0x11   :  { %s1307_s11 = smov 128   ;;  %s1308_s12 = smov 8  }
  0x12   :  { %40 = dma.hbm_to_vmem [thread:$0]  %s1440_s3, 8192, %s35_s25, [#allocation6], %s1307_s11, %s1307_s11, %s1308_s12  }
  0x13   :  { %s1309_s15 = smov [#allocation2]   ;;  %s1310_s17 = smov [#allocation7]  }
  0x14   :  { %s23_s16 = sshll.u32 %s1309_s15, 4  ;;  %s48_s18 = sshll.u32 %s1310_s17, 4  ;;  %s24_s16 = int_to_ptr.vmem [resolvable:$true] %s23_s16  ;;  %s49_s18 = int_to_ptr.vmem [resolvable:$true] %s48_s18 }
  0x15   :  { %s1234_s21 = scalar_lea.hbm %s1438_s1, 256 }
  0x16   :  { %p1235_p8 = scmp.ne.s32.totalorder %s1438_s1, %s1234_s21  ;;  %p1238_p9 = scmp.lt.u32.totalorder %s1234_s21, %s1438_s1 }
  0x18   :  { %p1240_p10 = pnand %p1238_p9, %p1235_p8 }
  0x1a   :  { %1243 = shalt.err (!%p1240_p10)
}
  0x1b   :  { %s1244_s3 = scalar_lea.vmem %s24_s16, 256  ;;  %p1249_p12 = scmp.lt.s32.totalorder %s24_s16, %s24_s16 }
  0x1c   :  { %p1245_p11 = scmp.ne.s32.totalorder %s24_s16, %s1244_s3  ;;  %p1250_p13 = scmp.lt.s32.totalorder %s1244_s3, %s1244_s3 }
  0x1e   :  { %p1251_p0 = por %p1250_p13, %p1249_p12 }
  0x20   :  { %p1252_p1 = pnand %p1251_p0, %p1245_p11 }
  0x22   :  { %1255 = shalt.err (!%p1252_p1)
}
  0x23   :  { %26 = dma.hbm_to_vmem [thread:$0]  %s1438_s1, 256, %s24_s16, [#allocation3]  }
  0x24   :  { %s1256_s30 = scalar_lea.hbm %s1442_s5, 2048 }
  0x25   :  { %p1257_p2 = scmp.ne.s32.totalorder %s1442_s5, %s1256_s30  ;;  %p1260_p3 = scmp.lt.u32.totalorder %s1256_s30, %s1442_s5 }
  0x27   :  { %p1262_p4 = pnand %p1260_p3, %p1257_p2 }
  0x29   :  { %1265 = shalt.err (!%p1262_p4)
}
  0x2a   :  { %s1266_s12 = scalar_lea.vmem %s49_s18, 2048  ;;  %p1271_p6 = scmp.lt.s32.totalorder %s49_s18, %s49_s18 }
  0x2b   :  { %p1267_p5 = scmp.ne.s32.totalorder %s49_s18, %s1266_s12  ;;  %p1272_p7 = scmp.lt.s32.totalorder %s1266_s12, %s1266_s12 }
  0x2d   :  { %p1273_p8 = por %p1272_p7, %p1271_p6 }
  0x2f   :  { %p1274_p9 = pnand %p1273_p8, %p1267_p5 }
  0x31   :  { %1277 = shalt.err (!%p1274_p9)
}
  0x32   :  { %s1311_s1 = smov 64   ;;  %s1312_s13 = smov 4  }
  0x33   :  { %54 = dma.hbm_to_vmem [thread:$0]  %s1442_s5, 2048, %s49_s18, [#allocation6], %s1311_s1, %s1311_s1, %s1312_s13  }
  0x34   :  { %1300 = dma.done.wait [#allocation3], 256  }
  0x35   :  { %1301 = vsyncadd [#allocation3], 4294967040 }
  0x36   :  { %1302 = dma.done.wait [#allocation6], 10240  }
  0x37   :  { %1303 = vsyncadd [#allocation6], 4294957056  ;;  %v1313_v0 = vmov 0   ;;  %v1314_v1 = vmov 2   ;;  %v67_v2 = vld [vmem:[%s1437_s0] sm:$0xff]  ;;  %v1315_v9 = vmov 1  }
  0x38   :  { %1094 = vset.pattern.permute.xlu0 %v1313_v0  ;;  %1096 = vset.pattern.permute.xlu1 %v1314_v1  ;;  %v1098_v3 = vld [vmem:[#allocation5 + $0x84] ss:$8 sps:$4 sm:$0xff]   ;;  %v1102_v5 = vld [vmem:[#allocation5 + $0x80] ss:$8 sps:$4 sm:$0xff]   ;;  %v1104_v7 = vld [vmem:[#allocation5 + $0x94] ss:$8 sps:$4 sm:$0xff]  }
  0x39   :  { %285 = vmatprep.mubr.bf16.mxu0 %v1313_v0  ;;  %406 = vmatprep.mubr.bf16.mxu1 %v1313_v0  ;;  %v1100_v4 = vld [vmem:[#allocation5 + $0x4] ss:$8 sps:$4 sm:$0xff]   ;;  %v1103_v6 = vld [vmem:[#allocation5] ss:$8 sps:$4 sm:$0xff]   ;;  %v1106_v8 = vld [vmem:[#allocation5 + $0x14] ss:$8 sps:$4 sm:$0xff]  }
  0x3a   :  { %72 = vperm.xlu0 %1094, %v67_v2   ;;  %100 = vperm.xlu1 %1096, %v67_v2   ;;  %v1108_v10 = vld [vmem:[#allocation5 + $0x90] ss:$8 sps:$4 sm:$0xff]   ;;  %v1110_v12 = vld [vmem:[#allocation5 + $0xa4] ss:$8 sps:$4 sm:$0xff]   ;;  %v1114_v14 = vld [vmem:[#allocation5 + $0xa0] ss:$8 sps:$4 sm:$0xff]  }
  0x3b   :  { %253 = vmatprep.subr.bf16.mxu0 %v1098_v3  ;;  %374 = vmatprep.subr.bf16.mxu1 %v1100_v4  ;;  %v1109_v11 = vld [vmem:[#allocation5 + $0x10] ss:$8 sps:$4 sm:$0xff]   ;;  %v1112_v13 = vld [vmem:[#allocation5 + $0x24] ss:$8 sps:$4 sm:$0xff]   ;;  %v1115_v15 = vld [vmem:[#allocation5 + $0x20] ss:$8 sps:$4 sm:$0xff]  }
  0x3c   :  { %254 = vmatpush1.bf16.msra.mxu0 %v1102_v5  ;;  %375 = vmatpush1.bf16.msra.mxu1 %v1103_v6  ;;  %v1116_v16 = vld [vmem:[#allocation5 + $0xb4] ss:$8 sps:$4 sm:$0xff]   ;;  %v1120_v18 = vld [vmem:[#allocation5 + $0xb0] ss:$8 sps:$4 sm:$0xff]   ;;  %v1122_v20 = vld [vmem:[#allocation5 + $0xc4] ss:$8 sps:$4 sm:$0xff]  }
  0x3d   :  { %255 = vmatprep.subr.bf16.mxu0 %v1104_v7  ;;  %376 = vmatprep.subr.bf16.mxu1 %v1106_v8  ;;  %v1118_v17 = vld [vmem:[#allocation5 + $0x34] ss:$8 sps:$4 sm:$0xff]   ;;  %v1121_v19 = vld [vmem:[#allocation5 + $0x30] ss:$8 sps:$4 sm:$0xff]   ;;  %v1124_v21 = vld [vmem:[#allocation5 + $0x44] ss:$8 sps:$4 sm:$0xff]  }
  0x3e   :  { %1095 = vset.pattern.permute.xlu0 %v1315_v9  ;;  %v1126_v22 = vld [vmem:[#allocation5 + $0xc0] ss:$8 sps:$4 sm:$0xff]   ;;  %v1128_v24 = vld [vmem:[#allocation5 + $0xd4] ss:$8 sps:$4 sm:$0xff]   ;;  %v1132_v26 = vld [vmem:[#allocation5 + $0xd0] ss:$8 sps:$4 sm:$0xff]  }
  0x3f   :  { %89 = vperm.xlu0 %1095, %v67_v2   ;;  %v1127_v23 = vld [vmem:[#allocation5 + $0x40] ss:$8 sps:$4 sm:$0xff]   ;;  %v1130_v25 = vld [vmem:[#allocation5 + $0x54] ss:$8 sps:$4 sm:$0xff]   ;;  %v1133_v27 = vld [vmem:[#allocation5 + $0x50] ss:$8 sps:$4 sm:$0xff]  }
  0x40   :  { %256 = vmatpush1.bf16.msra.mxu0 %v1108_v10  ;;  %377 = vmatpush1.bf16.msra.mxu1 %v1109_v11  ;;  %v1134_v28 = vld [vmem:[#allocation5 + $0xe4] ss:$8 sps:$4 sm:$0xff]   ;;  %v1138_v30 = vld [vmem:[#allocation5 + $0xe0] ss:$8 sps:$4 sm:$0xff]   ;;  %v1140_v32 = vld [vmem:[#allocation5 + $0xf4] ss:$8 sps:$4 sm:$0xff]  }
  0x41   :  { %257 = vmatprep.subr.bf16.mxu0 %v1110_v12  ;;  %378 = vmatprep.subr.bf16.mxu1 %v1112_v13  ;;  %v1136_v29 = vld [vmem:[#allocation5 + $0x64] ss:$8 sps:$4 sm:$0xff]   ;;  %v1139_v31 = vld [vmem:[#allocation5 + $0x60] ss:$8 sps:$4 sm:$0xff]   ;;  %v1142_v33 = vld [vmem:[#allocation5 + $0x74] ss:$8 sps:$4 sm:$0xff]  }
  0x42   :  { %v1144_v34 = vld [vmem:[#allocation5 + $0xf0] ss:$8 sps:$4 sm:$0xff]   ;;  %v1148_v36 = vld [vmem:[#allocation5 + $0x104] ss:$8 sps:$4 sm:$0xff]   ;;  %v968_v39 = vld [vmem:[#allocation2 + $0x4] ss:$0 sm:$0xff] }
  0x43   :  { %1097 = vset.pattern.permute.xlu0 %v1314_v1  ;;  %v1145_v35 = vld [vmem:[#allocation5 + $0x70] ss:$8 sps:$4 sm:$0xff]   ;;  %v1151_v37 = vld [vmem:[#allocation5 + $0x184] ss:$8 sps:$4 sm:$0xff]   ;;  %v971_v45 = vld [vmem:[#allocation2 + $0x6] ss:$0 sm:$0xff] }
  0x44   :  { %258 = vmatpush1.bf16.msra.mxu0 %v1114_v14  ;;  %379 = vmatpush1.bf16.msra.mxu1 %v1115_v15  ;;  %v964_v38 = vld [vmem:[#allocation2] ss:$0 sm:$0xff]  ;;  %v967_v44 = vld [vmem:[#allocation2 + $0x2] ss:$0 sm:$0xff]  ;;  %v966_v47 = vld [vmem:[#allocation2 + $0x1] ss:$0 sm:$0xff] }
  0x45   :  { %259 = vmatprep.subr.bf16.mxu0 %v1116_v16  ;;  %380 = vmatprep.subr.bf16.mxu1 %v1118_v17  ;;  %v965_v43 = vld [vmem:[%s1439_s2] ss:$0 sm:$0xff]  ;;  %v969_v48 = vld [vmem:[%s1439_s2 + $0x1] ss:$0 sm:$0xff]  ;;  %v970_v49 = vld [vmem:[#allocation2 + $0x5] ss:$0 sm:$0xff] }
  0x46   :  { %v1146_v63 = vld [vmem:[#allocation5 + $0x100] ss:$8 sps:$4 sm:$0xff]   ;;  %v1154_v4 = vld [vmem:[#allocation5 + $0x114] ss:$8 sps:$4 sm:$0xff]   ;;  %v1152_v6 = vld [vmem:[#allocation5 + $0x110] ss:$8 sps:$4 sm:$0xff]  }
  0x47   :  { %v1149_v1 = vld [vmem:[#allocation5 + $0x180] ss:$8 sps:$4 sm:$0xff]   ;;  %v1157_v5 = vld [vmem:[#allocation5 + $0x194] ss:$8 sps:$4 sm:$0xff]   ;;  %v1155_v7 = vld [vmem:[#allocation5 + $0x190] ss:$8 sps:$4 sm:$0xff]  }
  0x48   :  { %260 = vmatpush1.bf16.msra.mxu0 %v1120_v18  ;;  %381 = vmatpush1.bf16.msra.mxu1 %v1121_v19  ;;  %v1160_v8 = vld [vmem:[#allocation5 + $0x124] ss:$8 sps:$4 sm:$0xff]   ;;  %v1158_v10 = vld [vmem:[#allocation5 + $0x120] ss:$8 sps:$4 sm:$0xff]   ;;  %v1166_v12 = vld [vmem:[#allocation5 + $0x134] ss:$8 sps:$4 sm:$0xff]  }
  0x49   :  { %261 = vmatprep.subr.bf16.mxu0 %v1122_v20  ;;  %382 = vmatprep.subr.bf16.mxu1 %v1124_v21  ;;  %v1163_v9 = vld [vmem:[#allocation5 + $0x1a4] ss:$8 sps:$4 sm:$0xff]   ;;  %v1161_v11 = vld [vmem:[#allocation5 + $0x1a0] ss:$8 sps:$4 sm:$0xff]   ;;  %v1169_v13 = vld [vmem:[#allocation5 + $0x1b4] ss:$8 sps:$4 sm:$0xff]  }
  0x4a   :  { %v1004_v14 = vld [vmem:[#allocation2 + $0x8] ss:$0 sm:$0xff]  ;;  %v1024_v15 = vld [vmem:[#allocation2 + $0xc] ss:$0 sm:$0xff]  ;;  %v1172_v18 = vld [vmem:[#allocation5 + $0x144] ss:$8 sps:$4 sm:$0xff]  }
  0x4b   :  { %v1164_v16 = vld [vmem:[#allocation5 + $0x130] ss:$8 sps:$4 sm:$0xff]   ;;  %v1175_v19 = vld [vmem:[#allocation5 + $0x1c4] ss:$8 sps:$4 sm:$0xff]   ;;  %s1316_s3 = smov [#allocation8]  }
  0x4c   :  { %262 = vmatpush1.bf16.msra.mxu0 %v1126_v22  ;;  %383 = vmatpush1.bf16.msra.mxu1 %v1127_v23  ;;  %v1167_v17 = vld [vmem:[#allocation5 + $0x1b0] ss:$8 sps:$4 sm:$0xff]   ;;  %s954_s25 = sshll.u32 %s1316_s3, 4  ;;  %s955_s25 = int_to_ptr.vmem [resolvable:$true] %s954_s25 }
  0x4d   :  { %263 = vmatprep.subr.bf16.mxu0 %v1128_v24  ;;  %384 = vmatprep.subr.bf16.mxu1 %v1130_v25  ;;  %v1006_v20 = vld [vmem:[#allocation2 + $0x9] ss:$0 sm:$0xff]  ;;  %v1005_v23 = vld [vmem:[%s1439_s2 + $0x2] ss:$0 sm:$0xff]  ;;  %v1025_v24 = vld [vmem:[%s1439_s2 + $0x3] ss:$0 sm:$0xff]  ;;  %p1283_p11 = scmp.lt.s32.totalorder %s955_s25, %s955_s25 }
  0x4e   :  { %v1170_v25 = vld [vmem:[#allocation5 + $0x140] ss:$8 sps:$4 sm:$0xff]   ;;  %s1278_s27 = scalar_lea.vmem %s955_s25, 128 }
  0x4f   :  { %p1279_p10 = scmp.ne.s32.totalorder %s955_s25, %s1278_s27  ;;  %p1284_p12 = scmp.lt.s32.totalorder %s1278_s27, %s1278_s27 }
  0x50   :  { %264 = vmatpush1.bf16.msra.mxu0 %v1132_v26  ;;  %385 = vmatpush1.bf16.msra.mxu1 %v1133_v27  ;;  %v1173_v26 = vld [vmem:[#allocation5 + $0x1c0] ss:$8 sps:$4 sm:$0xff]  }
  0x51   :  { %265 = vmatprep.subr.bf16.mxu0 %v1134_v28  ;;  %386 = vmatprep.subr.bf16.mxu1 %v1136_v29  ;;  %v1007_v29 = vld [vmem:[#allocation2 + $0xa] ss:$0 sm:$0xff]  ;;  %p1285_p13 = por %p1284_p12, %p1283_p11 }
  0x53   :  { %p1286_p0 = pnand %p1285_p13, %p1279_p10 }
  0x54   :  { %266 = vmatpush1.bf16.msra.mxu0 %v1138_v30  ;;  %387 = vmatpush1.bf16.msra.mxu1 %v1139_v31  ;;  %v1178_v30 = vld [vmem:[#allocation5 + $0x154] ss:$8 sps:$4 sm:$0xff]  }
  0x55   :  { %267 = vmatprep.subr.bf16.mxu0 %v1140_v32  ;;  %388 = vmatprep.subr.bf16.mxu1 %v1142_v33  ;;  %v1181_v31 = vld [vmem:[#allocation5 + $0x1d4] ss:$8 sps:$4 sm:$0xff]  }
  0x56   :  { %v1027_v32 = vld [vmem:[#allocation2 + $0xe] ss:$0 sm:$0xff] }
  0x58   :  { %268 = vmatpush1.bf16.msra.mxu0 %v1144_v34  ;;  %389 = vmatpush1.bf16.msra.mxu1 %v1145_v35 }
  0x59   :  { %541 = vmatprep.subr.bf16.mxu0 %v1148_v36  ;;  %710 = vmatprep.subr.bf16.mxu1 %v1151_v37  ;;  %v1176_v36 = vld [vmem:[#allocation5 + $0x150] ss:$8 sps:$4 sm:$0xff]  }
  0x5a   :  { %v1179_v37 = vld [vmem:[#allocation5 + $0x1d0] ss:$8 sps:$4 sm:$0xff]  }
  0xb9   :  { %v73_v40 = vpop.permute.xlu0 %72  ;;  %v1402_v46 = vpop.permute.xlu1 %100 }
  0xba   :  { %v79_v41 = vmul.f32 %v964_v38, %v73_v40  ;;  %v133_v42 = vmul.f32 %v968_v39, %v73_v40  ;;  %v107_v51 = vmul.f32 %v967_v44, %v1402_v46  ;;  %v153_v52 = vmul.f32 %v971_v45, %v1402_v46  ;;  %v1185_v44 = vld [vmem:[#allocation5 + $0x1e0] ss:$8 sps:$4 sm:$0xff]  }
  0xbb   :  { %v421_v21 = vmul.f32 %v1004_v14, %v73_v40  ;;  %v590_v22 = vmul.f32 %v1024_v15, %v73_v40  ;;  %v441_v35 = vmul.f32 %v1007_v29, %v1402_v46  ;;  %v610_v40 = vmul.f32 %v1027_v32, %v1402_v46 }
  0xbc   :  { %v86_v53 = vadd.f32 %v965_v43, %v79_v41  ;;  %v140_v54 = vadd.f32 %v969_v48, %v133_v42  ;;  %v1184_v41 = vld [vmem:[#allocation5 + $0x164] ss:$8 sps:$4 sm:$0xff]   ;;  %v1182_v43 = vld [vmem:[#allocation5 + $0x160] ss:$8 sps:$4 sm:$0xff]   ;;  %v1190_v48 = vld [vmem:[#allocation5 + $0x174] ss:$8 sps:$4 sm:$0xff]  }
  0xbd   :  { %v428_v33 = vadd.f32 %v1005_v23, %v421_v21  ;;  %v597_v34 = vadd.f32 %v1025_v24, %v590_v22  ;;  %v1187_v42 = vld [vmem:[#allocation5 + $0x1e4] ss:$8 sps:$4 sm:$0xff]  }
  0xbe   :  { %v90_v50 = vpop.permute.xlu0 %89 }
  0xbf   :  { %v96_v55 = vmul.f32 %v966_v47, %v90_v50  ;;  %v146_v56 = vmul.f32 %v970_v49, %v90_v50  ;;  %v434_v27 = vmul.f32 %v1006_v20, %v90_v50  ;;  %v1193_v49 = vld [vmem:[#allocation5 + $0x1f4] ss:$8 sps:$4 sm:$0xff]  }
  0xc1   :  { %v97_v57 = vadd.f32 %v96_v55, %v86_v53  ;;  %v147_v58 = vadd.f32 %v146_v56, %v140_v54  ;;  %v435_v38 = vadd.f32 %v434_v27, %v428_v33  ;;  %v1194_v55 = vld [vmem:[#allocation7 + $0x40] sm:$0xff]  }
  0xc2   :  { %v1195_v56 = vld [vmem:[#allocation7] sm:$0xff]  }
  0xc3   :  { %v154_v59 = vadd.f32 %v153_v52, %v147_v58  ;;  %v108_v60 = vadd.f32 %v107_v51, %v97_v57  ;;  %v442_v45 = vadd.f32 %v441_v35, %v435_v38  ;;  %v1191_v51 = vld [vmem:[#allocation5 + $0x1f0] ss:$8 sps:$4 sm:$0xff]   ;;  %v1196_v57 = vld [vmem:[#allocation7 + $0x48] sm:$0xff]  }
  0xc4   :  { %v1197_v58 = vld [vmem:[#allocation7 + $0x8] sm:$0xff]  }
  0xc5   :  { %v155_v61 = vmax.f32 %v154_v59, 0.0  ;;  %v109_v62 = vmax.f32 %v108_v60, 0.0  ;;  %v443_v52 = vmax.f32 %v442_v45, 0.0  ;;  %v1198_v59 = vld [vmem:[#allocation7 + $0x50] sm:$0xff]  }
  0xc6   :  { %v1199_v60 = vld [vmem:[#allocation7 + $0x10] sm:$0xff]  }
  0xc7   :  { %v156_v2 = vpack.c.bf16 %v155_v61, %v155_v61  ;;  %v110_v3 = vpack.c.bf16 %v109_v62, %v109_v62  ;;  %v444_v53 = vpack.c.bf16 %v443_v52, %v443_v52  ;;  %v1200_v61 = vld [vmem:[#allocation7 + $0x58] sm:$0xff]  }
  0xc8   :  { %v1201_v62 = vld [vmem:[#allocation7 + $0x18] sm:$0xff]  }
  0xc9   :  { %286 = vmatmul.mubr.bf16.vlgmr.msra.gmra.mrb[0].mxu0 %v156_v2  ;;  %407 = vmatmul.mubr.bf16.vlgmr.msra.gmra.mrb[0].mxu1 %v110_v3  ;;  %v1204_v2 = vld [vmem:[#allocation7 + $0x68] sm:$0xff]  }
  0xca   :  { %542 = vmatpush1.bf16.msra.mxu0 %v1146_v63  ;;  %711 = vmatpush1.bf16.msra.mxu1 %v1149_v1  ;;  %v1202_v63 = vld [vmem:[#allocation7 + $0x60] sm:$0xff]   ;;  %v1205_v3 = vld [vmem:[#allocation7 + $0x28] sm:$0xff]  }
  0xcb   :  { %543 = vmatprep.subr.bf16.mxu0 %v1154_v4  ;;  %712 = vmatprep.subr.bf16.mxu1 %v1157_v5  ;;  %v1203_v1 = vld [vmem:[#allocation7 + $0x20] sm:$0xff]   ;;  %v1206_v4 = vld [vmem:[#allocation7 + $0x70] sm:$0xff]  }
  0xcc   :  { %573 = vmatprep.mubr.bf16.mxu0 %v1313_v0  ;;  %742 = vmatprep.mubr.bf16.mxu1 %v1313_v0  ;;  %v1026_v0 = vld [vmem:[#allocation2 + $0xd] ss:$0 sm:$0xff]  ;;  %v1207_v5 = vld [vmem:[#allocation7 + $0x30] sm:$0xff]  }
  0xcd   :  { %v603_v28 = vmul.f32 %v1026_v0, %v90_v50  ;;  %v1188_v50 = vld [vmem:[#allocation5 + $0x170] ss:$8 sps:$4 sm:$0xff]  }
  0xce   :  { %544 = vmatpush1.bf16.msra.mxu0 %v1152_v6  ;;  %713 = vmatpush1.bf16.msra.mxu1 %v1155_v7  ;;  %v1208_v6 = vld [vmem:[#allocation7 + $0x78] sm:$0xff]   ;;  %v753_v0 = vld [vmem:[%s1441_s4] sm:$0x3] }
  0xcf   :  { %545 = vmatprep.subr.bf16.mxu0 %v1160_v8  ;;  %714 = vmatprep.subr.bf16.mxu1 %v1163_v9  ;;  %v604_v39 = vadd.f32 %v603_v28, %v597_v34  ;;  %v1209_v7 = vld [vmem:[#allocation7 + $0x38] sm:$0xff]  }
  0xd1   :  { %v611_v47 = vadd.f32 %v610_v40, %v604_v39 }
  0xd2   :  { %546 = vmatpush1.bf16.msra.mxu0 %v1158_v10  ;;  %715 = vmatpush1.bf16.msra.mxu1 %v1161_v11 }
  0xd3   :  { %547 = vmatprep.subr.bf16.mxu0 %v1166_v12  ;;  %716 = vmatprep.subr.bf16.mxu1 %v1169_v13  ;;  %v612_v46 = vmax.f32 %v611_v47, 0.0 }
  0xd5   :  { %v613_v54 = vpack.c.bf16 %v612_v46, %v612_v46 }
  0xd6   :  { %548 = vmatpush1.bf16.msra.mxu0 %v1164_v16  ;;  %717 = vmatpush1.bf16.msra.mxu1 %v1167_v17 }
  0xd7   :  { %549 = vmatprep.subr.bf16.mxu0 %v1172_v18  ;;  %718 = vmatprep.subr.bf16.mxu1 %v1175_v19  ;;  %v755_v18 = vlaneseq }
  0xd9   :  { %v756_v19 = vshrl.u32 %v755_v18, 7 }
  0xda   :  { %550 = vmatpush1.bf16.msra.mxu0 %v1170_v25  ;;  %719 = vmatpush1.bf16.msra.mxu1 %v1173_v26 }
  0xdb   :  { %551 = vmatprep.subr.bf16.mxu0 %v1178_v30  ;;  %720 = vmatprep.subr.bf16.mxu1 %v1181_v31  ;;  %v757_v20 = vsub.s32 0, %v756_v19  ;;  %v761_v21 = vsub.s32 1, %v756_v19 }
  0xdd   :  { %v758_v25 = vrot.slane %v753_v0, %v757_v20  ;;  %v762_v29 = vrot.slane %v753_v0, %v761_v21 }
  0xde   :  { %552 = vmatpush1.bf16.msra.mxu0 %v1176_v36  ;;  %721 = vmatpush1.bf16.msra.mxu1 %v1179_v37 }
  0xdf   :  { %553 = vmatprep.subr.bf16.mxu0 %v1184_v41  ;;  %722 = vmatprep.subr.bf16.mxu1 %v1187_v42 }
  0xe2   :  { %554 = vmatpush1.bf16.msra.mxu0 %v1182_v43  ;;  %723 = vmatpush1.bf16.msra.mxu1 %v1185_v44  ;;  %v1044_v43 = vld [vmem:[%s1443_s6] ss:$0 sm:$0xff] }
  0xe3   :  { %555 = vmatprep.subr.bf16.mxu0 %v1190_v48  ;;  %724 = vmatprep.subr.bf16.mxu1 %v1193_v49 }
  0xe6   :  { %556 = vmatpush1.bf16.msra.mxu0 %v1188_v50  ;;  %725 = vmatpush1.bf16.msra.mxu1 %v1191_v51 }
  0xe7   :  { %1061 = vmatprep.subr.bf16.mxu0 %v1194_v55 }
  0xe9   :  { %574 = vmatmul.mubr.bf16.vlgmr.msra.gmra.mrb[4].mxu0 %v444_v53  ;;  %743 = vmatmul.mubr.bf16.vlgmr.msra.gmra.mrb[4].mxu1 %v613_v54 }
  0xea   :  { %1062 = vmatpush3.bf16.msra.mxu0 %v1195_v56 }
  0xeb   :  { %1063 = vmatprep.subr.bf16.mxu0 %v1196_v57 }
  0xee   :  { %1064 = vmatpush3.bf16.msra.mxu0 %v1197_v58 }
  0xef   :  { %1065 = vmatprep.subr.bf16.mxu0 %v1198_v59 }
  0xf2   :  { %1066 = vmatpush3.bf16.msra.mxu0 %v1199_v60 }
  0xf3   :  { %1067 = vmatprep.subr.bf16.mxu0 %v1200_v61 }
  0xf6   :  { %1068 = vmatpush3.bf16.msra.mxu0 %v1201_v62 }
  0xf7   :  { %1069 = vmatprep.subr.bf16.mxu0 %v1202_v63 }
  0xfa   :  { %1070 = vmatpush3.bf16.msra.mxu0 %v1203_v1 }
  0xfb   :  { %1071 = vmatprep.subr.bf16.mxu0 %v1204_v2 }
  0xfe   :  { %1072 = vmatpush3.bf16.msra.mxu0 %v1205_v3 }
  0xff   :  { %1073 = vmatprep.subr.bf16.mxu0 %v1206_v4 }
 0x102   :  { %1074 = vmatpush3.bf16.msra.mxu0 %v1207_v5 }
 0x103   :  { %1075 = vmatprep.subr.bf16.mxu0 %v1208_v6 }
 0x106   :  { %1076 = vmatpush3.bf16.msra.mxu0 %v1209_v7 }
 0x19c   :  { %v287_v8 = vpop.f32.mrb[0].mxu0  ;;  %v408_v9 = vpop.f32.mrb[0].mxu1 }
 0x19d   :  { %v409_v10 = vadd.f32 %v408_v9, %v287_v8  ;;  %v289_v11 = vpop.f32.mrb[1].mxu0  ;;  %v410_v12 = vpop.f32.mrb[1].mxu1 }
 0x19e   :  { %v411_v13 = vadd.f32 %v410_v12, %v289_v11  ;;  %v291_v14 = vpop.f32.mrb[2].mxu0  ;;  %v412_v15 = vpop.f32.mrb[2].mxu1 }
 0x19f   :  { %v292_v16 = vpop.f32.mrb[3].mxu0  ;;  %v413_v17 = vpop.f32.mrb[3].mxu1 }
 0x1bc   :  { %v575_v22 = vpop.f32.mrb[4].mxu0  ;;  %v744_v23 = vpop.f32.mrb[4].mxu1 }
 0x1bd   :  { %v582_v24 = vadd.f32 %v575_v22, %v409_v10  ;;  %v577_v26 = vpop.f32.mrb[5].mxu0  ;;  %v746_v27 = vpop.f32.mrb[5].mxu1 }
 0x1be   :  { %v583_v28 = vadd.f32 %v577_v26, %v411_v13  ;;  %v579_v30 = vpop.f32.mrb[6].mxu0  ;;  %v748_v31 = vpop.f32.mrb[6].mxu1 }
 0x1bf   :  { %v751_v32 = vadd.f32 %v744_v23, %v582_v24  ;;  %v580_v33 = vpop.f32.mrb[7].mxu0  ;;  %v749_v34 = vpop.f32.mrb[7].mxu1 }
 0x1c0   :  { %v752_v35 = vadd.f32 %v746_v27, %v583_v28 }
 0x1c1   :  { %v765_v36 = vadd.f32 %v758_v25, %v751_v32 }
 0x1c2   :  { %v766_v37 = vadd.f32 %v762_v29, %v752_v35 }
 0x1c3   :  { %v767_v38 = vmax.f32 %v765_v36, 0.0 }
 0x1c4   :  { %v768_v39 = vmax.f32 %v766_v37, 0.0 }
 0x1c5   :  { %v769_v41 = vpack.c.bf16 %v767_v38, %v767_v38 }
 0x1c6   :  { %v770_v40 = vpack.c.bf16 %v768_v39, %v768_v39 }
 0x1c8   :  { %938 = vmatprep.mubr.bf16.mxu0 %v770_v40 }
 0x1c9   :  { %939 = vmatmul.mubr.bf16.vlgmr.msra.gmra.mrb[8].mxu0 %v769_v41 }
 0x29c   :  { %v1077_v42 = vpop.f32.mrb[8].mxu0 }
 0x29d   :  { %v1078_v44 = vpop.f32.mrb[9].mxu0 }
 0x29e   :  { %v1079_v45 = vadd.f32 %v1078_v44, %v1077_v42  ;;  %v1080_v47 = vpop.f32.mrb[10].mxu0 }
 0x29f   :  { %v1081_v48 = vpop.f32.mrb[11].mxu0 }
 0x2a0   :  { %v941_v49 = vadd.f32 %v1079_v45, %v1044_v43 }
 0x2a2   :  { %1210 = vtanh.f32 %v941_v49 }
 0x2ac   :  { %v1211_v50 = vpop.eup %1210 }
 0x2ad   :  { %947 = vst [vmem:[#allocation8] sm:$0xff] %v1211_v50 }
 0x2ae   :  { %1289 = shalt.err (!%p1286_p0)
}
 0x2af   :  { %s1290_s29 = scalar_lea.hbm %s1444_s7, 128 }
 0x2b0   :  { %p1291_p1 = scmp.ne.s32.totalorder %s1444_s7, %s1290_s29  ;;  %p1294_p2 = scmp.lt.u32.totalorder %s1290_s29, %s1444_s7 }
 0x2b2   :  { %p1296_p3 = pnand %p1294_p2, %p1291_p1 }
 0x2b4   :  { %1299 = shalt.err (!%p1296_p3)
}
 0x2b5   :  { %957 = dma.vmem_to_hbm [thread:$0]  %s955_s25, 128, %s1444_s7, [#allocation4]  }
 0x2b6   :  { %1304 = dma.done.wait [#allocation4], 128  }
 0x2b7   :  { %1305 = vsyncadd [#allocation4], 4294967168 }
 0x2b8   :  { %961 = vsyncpa [#allocation3], 1 }
 0x2b9   :  { %962 = vsyncpa [#allocation6], 1 }
 0x2ba   :  { %963 = vsyncpa [#allocation4], 1 }

</bundles_post_ra>
